<compile_context>
chip_gen: v7x
topology: tpu7x:2x2x1
jax: 0.10.0
libtpu: 0.0.40
codegen_flags: <defaults>
</compile_context>

<pallas_src>
import functools

import jax
import jax.numpy as jnp
from jax.experimental import pallas as pl
from jax.experimental.pallas import tpu as pltpu

_BETA = 1.0  # matches SoftplusDer(beta=1.0)


def _softplus_der_kernel(x_ref, o_ref, *, beta):
    # Load in native (possibly 16-bit) dtype, compute in f32.
    x = x_ref[...].astype(jnp.float32)
    cx = jnp.clip(x, -20.0, 20.0)
    # exp(z)/(exp(z)+1) == 1/(1+exp(-z)); exact reciprocal keeps 1e-5 tolerance.
    out = pl.reciprocal(1.0 + jnp.exp(-beta * cx), approx=False)
    o_ref[...] = out.astype(o_ref.dtype)


def softplus_der(x, beta=_BETA):
    """Elementwise softplus derivative: sigmoid(beta * clamp(x, -20, 20))."""
    orig_shape = x.shape
    orig_dtype = x.dtype
    n = x.size

    # Keep HBM-resident I/O in the caller's float dtype (halves HBM traffic
    # for bf16/fp16); cast to f32 only inside the kernel.
    if orig_dtype in (jnp.float32, jnp.bfloat16, jnp.float16):
        io_dtype = orig_dtype
    else:
        io_dtype = jnp.float32
    x_io = x.astype(io_dtype)
    itemsize = jnp.dtype(io_dtype).itemsize
    sub = 8 if itemsize == 4 else 16  # min sublane tile: (8,128) f32, (16,128) 16-bit

    # Pick the widest lane-dense slab width that divides n exactly, so no
    # padded full-array copy is needed in the common case.
    lane = None
    for cand in (2048, 1024, 512, 256, 128):
        if n % cand == 0:
            lane = cand
            break

    padded = lane is None
    if padded:
        # Fallback for odd sizes: pad the flat tail up to a lane multiple.
        lane = 128
        n_pad = pl.cdiv(n, lane) * lane
        x_flat = jnp.pad(jnp.ravel(x_io), (0, n_pad - n))
    else:
        n_pad = n
        x_flat = jnp.ravel(x_io)

    rows = n_pad // lane
    x2d = x_flat.reshape(rows, lane)

    # ~2 MiB (f32) / ~1 MiB (16-bit) per block buffer. Double-buffered in+out
    # is then <= 8 MiB -> fits v5e's 16 MiB default scoped VMEM with headroom,
    # and is far below v7x's 64 MiB physical VMEM.
    target_elems = 512 * 1024
    block_rows = max(sub, target_elems // lane)
    if block_rows >= rows:
        block_rows = rows                      # full-extent block: (8,128) rule waived
    else:
        block_rows = (block_rows // sub) * sub  # keep sublane-aligned tiles

    grid = (pl.cdiv(rows, block_rows),)

    cost = pl.CostEstimate(
        flops=3 * n,
        transcendentals=n,
        bytes_accessed=2 * n * itemsize,
    )

    out2d = pl.pallas_call(
        functools.partial(_softplus_der_kernel, beta=beta),
        out_shape=jax.ShapeDtypeStruct((rows, lane), io_dtype),
        grid=grid,
        in_specs=[pl.BlockSpec((block_rows, lane), lambda i: (i, 0))],
        out_specs=pl.BlockSpec((block_rows, lane), lambda i: (i, 0)),
        compiler_params=pltpu.CompilerParams(
            dimension_semantics=("parallel",),
        ),
        cost_estimate=cost,
    )(x2d)

    if padded:
        out = out2d.reshape(-1)[:n].reshape(orig_shape)
    else:
        out = out2d.reshape(orig_shape)

    # TODO(synk): the PyTorch module prints a warning when the output contains
    # NaN; that data-dependent host-side print has no clean Pallas equivalent.
    return out.astype(orig_dtype)


def _reference(x, beta=_BETA):
    cx = jnp.clip(x.astype(jnp.float32), -20.0, 20.0)
    e = jnp.exp(beta * cx)
    return e / (e + 1.0)


if __name__ == "__main__":
    key = jax.random.PRNGKey(0)
    # NCHW input, small shape consistent with an activation-derivative module.
    x = jax.random.normal(key, (2, 4, 16, 16), dtype=jnp.float32) * 10.0

    out = softplus_der(x)
    out = jax.block_until_ready(out)

    ref = _reference(x)
    assert out.shape == x.shape
    assert out.dtype == x.dtype
    assert jnp.max(jnp.abs(out - ref)) < 1e-5

    print("KERNEL_OK")
</pallas_src>

<mosaic_0001>
module attributes {stable_mosaic.version = 11 : i64} {
  func.func @_softplus_der_kernel(%arg0: i32, %arg1: memref<1x2048xf32, #tpu.memory_space<vmem>>, %arg2: memref<1x2048xf32, #tpu.memory_space<vmem>>) attributes {dimension_semantics = [#tpu.dimension_semantics<parallel>], iteration_bounds = array<i64: 1>, scalar_prefetch = 0 : i64, scratch_operands = 0 : i64, tpu.core_type = #tpu.core_type<tc>, window_params = [{transform_indices = @transform_0, window_bounds = array<i64: 1, 2048>}, {transform_indices = @transform_1, window_bounds = array<i64: 1, 2048>}]} {
    %c0 = arith.constant 0 : index
    %c0_0 = arith.constant 0 : index
    %0 = vector.load %arg1[%c0, %c0_0] : memref<1x2048xf32, #tpu.memory_space<vmem>>, vector<1x2048xf32>
    %cst = arith.constant -2.000000e+01 : f32
    %cst_1 = arith.constant 2.000000e+01 : f32
    %1 = vector.broadcast %cst : f32 to vector<1x2048xf32>
    %2 = arith.maximumf %1, %0 : vector<1x2048xf32>
    %3 = vector.broadcast %cst_1 : f32 to vector<1x2048xf32>
    %4 = arith.minimumf %3, %2 : vector<1x2048xf32>
    %cst_2 = arith.constant -1.000000e+00 : f32
    %5 = vector.broadcast %cst_2 : f32 to vector<1x2048xf32>
    %6 = arith.mulf %5, %4 : vector<1x2048xf32>
    %7 = math.exp %6 : vector<1x2048xf32>
    %cst_3 = arith.constant 1.000000e+00 : f32
    %8 = vector.broadcast %cst_3 : f32 to vector<1x2048xf32>
    %9 = arith.addf %8, %7 : vector<1x2048xf32>
    %10 = tpu.reciprocal %9 : vector<1x2048xf32> -> vector<1x2048xf32>
    %c0_4 = arith.constant 0 : index
    %c0_5 = arith.constant 0 : index
    %11 = vector.load %arg2[%c0_4, %c0_5] : memref<1x2048xf32, #tpu.memory_space<vmem>>, vector<1x2048xf32>
    tpu.vector_store %arg2[%c0_4, %c0_5], %10 {strides = array<i32>} : memref<1x2048xf32, #tpu.memory_space<vmem>>, vector<1x2048xf32>,
    return
  }
  func.func @transform_0(%arg0: i32) -> (i32, i32) {
    %c0_i32 = arith.constant 0 : i32
    %c0_i32_0 = arith.constant 0 : i32
    return %arg0, %c0_i32 : i32, i32
  }
  func.func @transform_1(%arg0: i32) -> (i32, i32) {
    %c0_i32 = arith.constant 0 : i32
    %c0_i32_0 = arith.constant 0 : i32
    return %arg0, %c0_i32 : i32, i32
  }
}

</mosaic_0001>

<bundles_post_ra>
// kernel: tpu_custom_call.1
= control target key start
LH: loop header
LB: loop body
LE: loop exit
PB: predicated region body
PF: predicated region fallthrough
CT: control target
= control target key end

     0   :  { %6 = vsyncpa [#allocation3], 0  ;;  %s150_s0 = inlined_call_operand.hbm [shape: f32[1,2048], index: 0, kind: input, shape index: {}]   ;;  %s151_s1 = inlined_call_operand.hbm [shape: f32[1,2048], index: 1, kind: output, shape index: {}]  }
   0x1   :  { %7 = vsyncpa [#allocation4], 0  ;;  %s114_s6 = smov [#allocation2]   ;;  %s66_s10 = scalar_lea.hbm %s150_s0, 256 }
   0x2   :  { %s14_s7 = sshll.u32 %s114_s6, 4  ;;  %p67_p0 = scmp.ne.s32.totalorder %s150_s0, %s66_s10  ;;  %s15_s7 = int_to_ptr.vmem [resolvable:$true] %s14_s7 }
   0x3   :  { %p70_p1 = scmp.lt.u32.totalorder %s66_s10, %s150_s0 }
   0x5   :  { %p72_p2 = pnand %p70_p1, %p67_p0 }
   0x7   :  { %75 = shalt.err (!%p72_p2)
}
   0x8   :  { %s76_s15 = scalar_lea.vmem %s15_s7, 256  ;;  %p81_p4 = scmp.lt.s32.totalorder %s15_s7, %s15_s7 }
   0x9   :  { %p77_p3 = scmp.ne.s32.totalorder %s15_s7, %s76_s15  ;;  %p82_p5 = scmp.lt.s32.totalorder %s76_s15, %s76_s15 }
   0xb   :  { %p83_p6 = por %p82_p5, %p81_p4 }
   0xd   :  { %p84_p7 = pnand %p83_p6, %p77_p3 }
   0xf   :  { %87 = shalt.err (!%p84_p7)
}
  0x10   :  { %17 = dma.hbm_to_vmem [thread:$0]  %s150_s0, 256, %s15_s7, [#allocation3]  }
  0x11   :  { %110 = dma.done.wait [#allocation3], 256  }
  0x12   :  { %111 = vsyncadd [#allocation3], 4294967040  ;;  %v21_v0 = vld [vmem:[#allocation2] sm:$0xff]  ;;  %v22_v1 = vld [vmem:[#allocation2 + $0x8] sm:$0xff]  ;;  %s115_s18 = smov [#allocation5]  }
  0x13   :  { %v54_v2 = vclamps-f32 %v21_v0, 20.0  ;;  %v55_v3 = vclamps-f32 %v22_v1, 20.0  ;;  %s45_s0 = sshll.u32 %s115_s18, 4  ;;  %s46_s0 = int_to_ptr.vmem [resolvable:$true] %s45_s0 }
  0x14   :  { %s88_s19 = scalar_lea.vmem %s46_s0, 256  ;;  %p93_p9 = scmp.lt.s32.totalorder %s46_s0, %s46_s0 }
  0x15   :  { %v27_v4 = vmul.f32 -1.0, %v54_v2  ;;  %v28_v5 = vmul.f32 -1.0, %v55_v3  ;;  %p89_p8 = scmp.ne.s32.totalorder %s46_s0, %s88_s19  ;;  %p94_p10 = scmp.lt.s32.totalorder %s88_s19, %s88_s19 }
  0x17   :  { %v29_v6 = vmul.f32 1.442695, %v27_v4  ;;  %v31_v7 = vmul.f32 1.442695, %v28_v5  ;;  %p95_p11 = por %p94_p10, %p93_p9 }
  0x19   :  { %58 = vpow2.f32 %v29_v6  ;;  %p96_p12 = pnand %p95_p11, %p89_p8 }
  0x1a   :  { %60 = vpow2.f32 %v31_v7 }
  0x23   :  { %v59_v8 = vpop.eup %58 }
  0x24   :  { %v61_v9 = vpop.eup %60  ;;  %v33_v10 = vadd.f32 1.0, %v59_v8 }
  0x25   :  { %v34_v11 = vadd.f32 1.0, %v61_v9 }
  0x26   :  { %62 = vrcp.f32 %v33_v10 }
  0x27   :  { %64 = vrcp.f32 %v34_v11 }
  0x30   :  { %v63_v12 = vpop.eup %62 }
  0x31   :  { %v65_v13 = vpop.eup %64  ;;  %37 = vst [vmem:[#allocation5] sm:$0xff] %v63_v12 }
  0x32   :  { %38 = vst [vmem:[#allocation5 + $0x8] sm:$0xff] %v65_v13 }
  0x33   :  { %99 = shalt.err (!%p96_p12)
}
  0x34   :  { %s100_s22 = scalar_lea.hbm %s151_s1, 256 }
  0x35   :  { %p101_p13 = scmp.ne.s32.totalorder %s151_s1, %s100_s22  ;;  %p104_p0 = scmp.lt.u32.totalorder %s100_s22, %s151_s1 }
  0x37   :  { %p106_p1 = pnand %p104_p0, %p101_p13 }
  0x39   :  { %109 = shalt.err (!%p106_p1)
}
  0x3a   :  { %48 = dma.vmem_to_hbm [thread:$0]  %s46_s0, 256, %s151_s1, [#allocation4]  }
  0x3b   :  { %112 = dma.done.wait [#allocation4], 256  }
  0x3c   :  { %113 = vsyncadd [#allocation4], 4294967040 }
  0x3d   :  { %52 = vsyncpa [#allocation3], 1 }
  0x3e   :  { %53 = vsyncpa [#allocation4], 1 }

</bundles_post_ra>
